<compile_context>
chip_gen: v7x
topology: tpu7x:2x2x1
jax: 0.10.0
libtpu: 0.0.40
codegen_flags: <defaults>
</compile_context>

<pallas_src>
import functools

import jax
import jax.numpy as jnp
from jax import lax
from jax.experimental import pallas as pl
from jax.experimental.pallas import tpu as pltpu

_MIN_STEPS = 16     # >= 8 grid steps per TensorCore on v7x megacore
_FLOOR_ROWS = 256   # don't shrink tiles below this just to add steps


def _rmsnorm_kernel(x_ref, g_ref, o_ref, *, scale, eps):
    # x_ref: (tile_rows, dim)   g_ref: (1, dim)   o_ref: (tile_rows, dim)
    x = x_ref[...].astype(jnp.float32)
    g = g_ref[...].astype(jnp.float32)               # broadcasts over rows

    # torch.norm(x, dim=-1, keepdim=True) * dim**-0.5, clamped to eps:
    #   1 / max(sqrt(sumsq) * scale, eps) == rsqrt(max(sumsq * scale^2, eps^2))
    ms = jnp.sum(x * x, axis=-1, keepdims=True) * jnp.float32(scale * scale)
    inv = lax.rsqrt(jnp.maximum(ms, jnp.float32(eps * eps)))   # (tile_rows, 1)

    o_ref[...] = (x * inv * g).astype(o_ref.dtype)


@functools.lru_cache(maxsize=None)
def _vmem_limit_bytes():
    cap = 128 * 1024 * 1024
    try:
        cap = int(pltpu.get_tpu_info().vmem_capacity_bytes)
    except Exception:
        pass
    # v7x: 64 MiB / TC -> leave headroom.  v5e/v6e: 128 MiB -> take more.
    if cap <= 80 * 1024 * 1024:
        return 40 * 1024 * 1024
    return 64 * 1024 * 1024


def _choose_tile_rows(rows, dim, itemsize, vmem_limit):
    """Row-tile size: pipeline-deep, VMEM-safe, sublane-packed."""
    # Sublane packing: 4B dtypes pack 8 rows / tile, 2B -> 16, 1B -> 32.
    align = max(8, 32 // max(1, itemsize))
    if rows <= align:
        return rows  # one full-array block (block == array dim is legal)

    # VMEM per tile row: double-buffered in + out (native dtype) plus roughly
    # three f32 slab temporaries from the in-kernel upcast.  Keep the whole
    # working set to about a third of the scoped VMEM limit.
    bytes_per_row = max(1, dim * (4 * itemsize + 12))
    max_rows = (vmem_limit // 3) // bytes_per_row
    max_rows = max(align, (max_rows // align) * align)

    # Target at least _MIN_STEPS grid steps so DMA overlaps compute (and both
    # TensorCores get >= 8 steps each on v7x), with a floor so tiles never
    # degenerate to tiny, overhead-dominated blocks.
    target = max(_FLOOR_ROWS, -(-rows // _MIN_STEPS))
    tile = min(max_rows, target)
    tile = max(align, (tile // align) * align)
    if tile >= rows:
        return rows  # single tile covering the whole array
    return tile


@functools.lru_cache(maxsize=None)
def _build_rmsnorm_call(rows, dim, dtype_name, tile_rows, scale, eps, vmem_limit):
    kernel = functools.partial(_rmsnorm_kernel, scale=scale, eps=eps)
    call = pl.pallas_call(
        kernel,
        out_shape=jax.ShapeDtypeStruct((rows, dim), jnp.dtype(dtype_name)),
        grid=(pl.cdiv(rows, tile_rows),),
        in_specs=[
            pl.BlockSpec((tile_rows, dim), lambda i: (i, 0)),
            pl.BlockSpec((1, dim), lambda i: (0, 0)),
        ],
        out_specs=pl.BlockSpec((tile_rows, dim), lambda i: (i, 0)),
        compiler_params=pltpu.CompilerParams(
            dimension_semantics=("parallel",),
            vmem_limit_bytes=vmem_limit,
        ),
    )
    return jax.jit(call)


def rmsnorm(x, g, *, eps=1e-8, tile_rows=None):
    """RMSNorm over the last axis of x with per-feature gain g (shape (dim,))."""
    orig_shape = x.shape
    dim = orig_shape[-1]
    scale = float(dim) ** (-0.5)

    # Flatten leading dims into rows.  I/O stays in the caller's dtype
    # (bf16 stays bf16 in HBM); the f32 upcast happens only inside the kernel.
    x2 = x.reshape(-1, dim)
    rows = x2.shape[0]

    vmem_limit = _vmem_limit_bytes()
    if tile_rows is None:
        tile_rows = _choose_tile_rows(
            rows, dim, jnp.dtype(x.dtype).itemsize, vmem_limit
        )
    tile_rows = int(max(1, min(tile_rows, rows)))

    g2 = g.reshape(1, dim)

    call = _build_rmsnorm_call(
        rows, dim, jnp.dtype(x.dtype).name, tile_rows, scale, float(eps), vmem_limit
    )
    out = call(x2, g2)
    return out.reshape(orig_shape)


def _reference_rmsnorm(x, g, eps=1e-8):
    dim = x.shape[-1]
    scale = dim ** (-0.5)
    norm = jnp.linalg.norm(x.astype(jnp.float32), axis=-1, keepdims=True) * scale
    norm = jnp.maximum(norm, eps)
    return (x.astype(jnp.float32) / norm * g.astype(jnp.float32)).astype(x.dtype)


if __name__ == "__main__":
    key = jax.random.PRNGKey(0)
    batch, seq, dim = 2, 8, 32

    x = jax.random.normal(key, (batch, seq, dim), dtype=jnp.float32)
    # nn.Parameter(torch.ones(dim)) — deterministic init of the gain.
    g = jnp.ones((dim,), dtype=jnp.float32)

    out = rmsnorm(x, g, eps=1e-8)
    out = jax.block_until_ready(out)
    ref = _reference_rmsnorm(x, g, eps=1e-8)
    assert out.shape == x.shape
    assert jnp.allclose(out, ref, atol=1e-5, rtol=1e-5), "f32 mismatch vs reference"

    # bf16 I/O smoke test (native-dtype path; looser tolerance for bf16).
    xb = x.astype(jnp.bfloat16)
    gb = g.astype(jnp.bfloat16)
    outb = jax.block_until_ready(rmsnorm(xb, gb, eps=1e-8))
    refb = _reference_rmsnorm(xb, gb, eps=1e-8)
    assert outb.dtype == jnp.bfloat16
    assert jnp.allclose(
        outb.astype(jnp.float32), refb.astype(jnp.float32), atol=2e-2, rtol=2e-2
    ), "bf16 mismatch vs reference"

    # Second call with the same static config must hit the lru_cache / jit cache.
    _ = jax.block_until_ready(rmsnorm(x, g, eps=1e-8))

    print("KERNEL_OK")
</pallas_src>

<mosaic_0001>
module attributes {stable_mosaic.version = 11 : i64} {
  func.func @_rmsnorm_kernel(%arg0: i32, %arg1: memref<16x32xf32, #tpu.memory_space<vmem>>, %arg2: memref<1x32xf32, #tpu.memory_space<vmem>>, %arg3: memref<16x32xf32, #tpu.memory_space<vmem>>) attributes {dimension_semantics = [#tpu.dimension_semantics<parallel>], iteration_bounds = array<i64: 1>, scalar_prefetch = 0 : i64, scratch_operands = 0 : i64, tpu.core_type = #tpu.core_type<tc>, window_params = [{transform_indices = @transform_0, window_bounds = array<i64: 16, 32>}, {pipeline_mode = #tpu.pipeline_mode<synchronous>, transform_indices = @transform_1, window_bounds = array<i64: 1, 32>}, {transform_indices = @transform_2, window_bounds = array<i64: 16, 32>}]} {
    %c0 = arith.constant 0 : index
    %c0_0 = arith.constant 0 : index
    %0 = vector.load %arg1[%c0, %c0_0] : memref<16x32xf32, #tpu.memory_space<vmem>>, vector<16x32xf32>
    %c0_1 = arith.constant 0 : index
    %c0_2 = arith.constant 0 : index
    %1 = vector.load %arg2[%c0_1, %c0_2] : memref<1x32xf32, #tpu.memory_space<vmem>>, vector<1x32xf32>
    %2 = arith.mulf %0, %0 : vector<16x32xf32>
    %cst = arith.constant dense<0.000000e+00> : vector<16xf32>
    %3 = vector.multi_reduction <add>, %2, %cst [1] : vector<16x32xf32> to vector<16xf32>
    %4 = vector.shape_cast %3 : vector<16xf32> to vector<16x1xf32>
    %cst_3 = arith.constant 3.125000e-02 : f32
    %5 = vector.broadcast %cst_3 : f32 to vector<16x1xf32>
    %6 = arith.mulf %4, %5 : vector<16x1xf32>
    %cst_4 = arith.constant 1.000000e-16 : f32
    %7 = vector.broadcast %cst_4 : f32 to vector<16x1xf32>
    %8 = arith.maximumf %6, %7 : vector<16x1xf32>
    %9 = math.rsqrt %8 : vector<16x1xf32>
    %10 = vector.broadcast %9 : vector<16x1xf32> to vector<16x32xf32>
    %11 = arith.mulf %0, %10 : vector<16x32xf32>
    %12 = vector.broadcast %1 : vector<1x32xf32> to vector<16x32xf32>
    %13 = arith.mulf %11, %12 : vector<16x32xf32>
    %c0_5 = arith.constant 0 : index
    %c0_6 = arith.constant 0 : index
    %14 = vector.load %arg3[%c0_5, %c0_6] : memref<16x32xf32, #tpu.memory_space<vmem>>, vector<16x32xf32>
    tpu.vector_store %arg3[%c0_5, %c0_6], %13 {strides = array<i32>} : memref<16x32xf32, #tpu.memory_space<vmem>>, vector<16x32xf32>,
    return
  }
  func.func @transform_0(%arg0: i32) -> (i32, i32) {
    %c0_i32 = arith.constant 0 : i32
    %c0_i32_0 = arith.constant 0 : i32
    return %arg0, %c0_i32 : i32, i32
  }
  func.func @transform_1(%arg0: i32) -> (i32, i32) {
    %c0_i32 = arith.constant 0 : i32
    %c0_i32_0 = arith.constant 0 : i32
    %c0_i32_1 = arith.constant 0 : i32
    return %c0_i32, %c0_i32_0 : i32, i32
  }
  func.func @transform_2(%arg0: i32) -> (i32, i32) {
    %c0_i32 = arith.constant 0 : i32
    %c0_i32_0 = arith.constant 0 : i32
    return %arg0, %c0_i32 : i32, i32
  }
}

</mosaic_0001>

<bundles_post_ra>
// kernel: tpu_custom_call.1
= control target key start
LH: loop header
LB: loop body
LE: loop exit
PB: predicated region body
PF: predicated region fallthrough
CT: control target
= control target key end

     0   :  { %7 = vsyncpa [#allocation3], 0  ;;  %s234_s0 = inlined_call_operand.hbm [shape: f32[16,32], index: 0, kind: input, shape index: {}]   ;;  %s235_s1 = inlined_call_operand.hbm [shape: f32[1,32], index: 1, kind: input, shape index: {}]   ;;  %s236_s2 = inlined_call_operand.hbm [shape: f32[16,32], index: 2, kind: output, shape index: {}]  }
   0x1   :  { %8 = vsyncpa [#allocation6], 0 }
   0x2   :  { %9 = vsyncpa [#allocation4], 0  ;;  %s168_s9 = smov [#allocation2]   ;;  %s96_s13 = scalar_lea.hbm %s234_s0, 256 }
   0x3   :  { %s15_s10 = sshll.u32 %s168_s9, 4  ;;  %p97_p0 = scmp.ne.s32.totalorder %s234_s0, %s96_s13  ;;  %s16_s10 = int_to_ptr.vmem [resolvable:$true] %s15_s10 }
   0x4   :  { %p100_p1 = scmp.lt.u32.totalorder %s96_s13, %s234_s0 }
   0x6   :  { %p102_p2 = pnand %p100_p1, %p97_p0 }
   0x8   :  { %105 = shalt.err (!%p102_p2)
}
   0x9   :  { %s106_s18 = scalar_lea.vmem %s16_s10, 256  ;;  %p111_p4 = scmp.lt.s32.totalorder %s16_s10, %s16_s10 }
   0xa   :  { %p107_p3 = scmp.ne.s32.totalorder %s16_s10, %s106_s18  ;;  %p112_p5 = scmp.lt.s32.totalorder %s106_s18, %s106_s18 }
   0xc   :  { %p113_p6 = por %p112_p5, %p111_p4 }
   0xe   :  { %p114_p7 = pnand %p113_p6, %p107_p3 }
  0x10   :  { %117 = shalt.err (!%p114_p7)
}
  0x11   :  { %s169_s19 = smov 128   ;;  %s170_s20 = smov 8  }
  0x12   :  { %21 = dma.hbm_to_vmem [thread:$0]  %s234_s0, 256, %s16_s10, [#allocation3], %s169_s19, %s169_s19, %s170_s20  }
  0x13   :  { %s171_s23 = smov [#allocation5]   ;;  %s118_s27 = scalar_lea.hbm %s235_s1, 16 }
  0x14   :  { %s28_s24 = sshll.u32 %s171_s23, 4  ;;  %p119_p8 = scmp.ne.s32.totalorder %s235_s1, %s118_s27  ;;  %s29_s24 = int_to_ptr.vmem [resolvable:$true] %s28_s24 }
  0x15   :  { %p122_p9 = scmp.lt.u32.totalorder %s118_s27, %s235_s1 }
  0x17   :  { %p124_p10 = pnand %p122_p9, %p119_p8 }
  0x19   :  { %127 = shalt.err (!%p124_p10)
}
  0x1a   :  { %s128_s4 = scalar_lea.vmem %s29_s24, 16  ;;  %s132_s0 = scalar_lea.vmem %s29_s24, 32 }
  0x1b   :  { %p129_p11 = scmp.ne.s32.totalorder %s29_s24, %s128_s4  ;;  %p133_p12 = scmp.lt.s32.totalorder %s29_s24, %s29_s24 }
  0x1c   :  { %p134_p13 = scmp.lt.s32.totalorder %s132_s0, %s128_s4 }
  0x1e   :  { %p135_p0 = por %p134_p13, %p133_p12 }
  0x20   :  { %p136_p1 = pnand %p135_p0, %p129_p11 }
  0x22   :  { %139 = shalt.err (!%p136_p1)
}
  0x23   :  { %31 = dma.hbm_to_vmem [thread:$0]  %s235_s1, 16, %s29_s24, [#allocation6]  }
  0x24   :  { %162 = dma.done.wait [#allocation3], 256  }
  0x25   :  { %163 = vsyncadd [#allocation3], 4294967040 }
  0x26   :  { %164 = dma.done.wait [#allocation6], 16  }
  0x27   :  { %165 = vsyncadd [#allocation6], 4294967280  ;;  %v38_v0 = vld [vmem:[#allocation2] sm:$0xff]  ;;  %vm43_vm0 = vcmask 261120   ;;  %v39_v1 = vld [vmem:[#allocation2 + $0x8] sm:$0xff]  ;;  %s172_s1 = smov [#allocation7]  }
  0x28   :  { %v41_v2 = vmul.f32 %v38_v0, %v38_v0  ;;  %v42_v3 = vmul.f32 %v39_v1, %v39_v1  ;;  %v86_v13 = vld [vmem:[#allocation5] ss:$0 sm:$0xff]  ;;  %s73_s7 = sshll.u32 %s172_s1, 4  ;;  %s74_s7 = int_to_ptr.vmem [resolvable:$true] %s73_s7 }
  0x29   :  { %s140_s8 = scalar_lea.vmem %s74_s7, 256  ;;  %p145_p3 = scmp.lt.s32.totalorder %s74_s7, %s74_s7 }
  0x2a   :  { %v44_v4 = vsel %vm43_vm0, %v41_v2, 0.0  ;;  %v47_v5 = vsel %vm43_vm0, %v42_v3, 0.0  ;;  %p141_p2 = scmp.ne.s32.totalorder %s74_s7, %s140_s8  ;;  %p146_p4 = scmp.lt.s32.totalorder %s140_s8, %s140_s8 }
  0x2b   :  { %45 = vadd.xlane.f32.xlu0 %v44_v4 }
  0x2c   :  { %p147_p5 = por %p146_p4, %p145_p3 }
  0x2e   :  { %p148_p6 = pnand %p147_p5, %p141_p2 }
  0x2f   :  { %48 = vadd.xlane.f32.xlu0 %v47_v5 }
  0xb8   :  { %v46_v6 = vpop.xlane.xlu0 %45 }
  0xb9   :  { %v50_v7 = vmul.f32 0.03125, %v46_v6 }
  0xbb   :  { %v52_v8 = vmax.f32 %v50_v7, 1e-16 }
  0xbc   :  { %v49_v9 = vpop.xlane.xlu0 %48 }
  0xbd   :  { %92 = vrsqrt.f32 %v52_v8  ;;  %v51_v10 = vmul.f32 0.03125, %v49_v9 }
  0xbf   :  { %v53_v11 = vmax.f32 %v51_v10, 1e-16 }
  0xc1   :  { %94 = vrsqrt.f32 %v53_v11 }
  0xc7   :  { %v93_v12 = vpop.eup %92 }
  0xc8   :  { %v56_v14 = vmul.f32 %v93_v12, %v38_v0 }
  0xca   :  { %v64_v15 = vmul.f32 %v86_v13, %v56_v14 }
  0xcb   :  { %v95_v16 = vpop.eup %94 }
  0xcc   :  { %v57_v17 = vmul.f32 %v95_v16, %v39_v1  ;;  %66 = vst.msk [vmem:[#allocation7] sm:$0xff] %vm43_vm0, %v64_v15 }
  0xce   :  { %v65_v18 = vmul.f32 %v86_v13, %v57_v17 }
  0xd0   :  { %67 = vst.msk [vmem:[#allocation7 + $0x8] sm:$0xff] %vm43_vm0, %v65_v18 }
  0xd1   :  { %151 = shalt.err (!%p148_p6)
}
  0xd2   :  { %s152_s11 = scalar_lea.hbm %s236_s2, 256 }
  0xd3   :  { %p153_p7 = scmp.ne.s32.totalorder %s236_s2, %s152_s11  ;;  %p156_p8 = scmp.lt.u32.totalorder %s152_s11, %s236_s2 }
  0xd5   :  { %p158_p9 = pnand %p156_p8, %p153_p7 }
  0xd7   :  { %161 = shalt.err (!%p158_p9)
}
  0xd8   :  { %79 = dma.vmem_to_hbm [thread:$0]  %s74_s7, 256, %s236_s2, [#allocation4], %s169_s19, %s169_s19, %s170_s20  }
  0xd9   :  { %166 = dma.done.wait [#allocation4], 256  }
  0xda   :  { %167 = vsyncadd [#allocation4], 4294967040 }
  0xdb   :  { %83 = vsyncpa [#allocation3], 1 }
  0xdc   :  { %84 = vsyncpa [#allocation6], 1 }
  0xdd   :  { %85 = vsyncpa [#allocation4], 1 }

</bundles_post_ra>
